<compile_context>
chip_gen: v7x
topology: tpu7x:2x2x1
jax: 0.10.0
libtpu: 0.0.40
codegen_flags: <defaults>
</compile_context>

<pallas_src>
import jax
import jax.numpy as jnp
from jax.experimental import pallas as pl
from jax.experimental.pallas import tpu as pltpu


def csa_kernel(x_ref, c_ref, wc_ref, bc_ref, masks_ref, o_ref):
    # ---- weight classifier: softmax(c @ Wc + bc) over the conditions axis ----
    logits = jnp.dot(c_ref[...], wc_ref[...],
                     preferred_element_type=jnp.float32) + bc_ref[...]       # (bm, K)
    logits = logits - jnp.max(logits, axis=-1, keepdims=True)
    e = jnp.exp(logits)
    # Normalize on the tiny (bm, K) tensor; exact reciprocal keeps tight numerics
    # vs. the reference (this op is negligible either way).
    w = e * pl.reciprocal(jnp.sum(e, axis=-1, keepdims=True), approx=False)   # (bm, K)

    # ---- out = x * (w @ (masks / K)) ; the 1/K is pre-folded into masks_ref ----
    mixed = jnp.dot(w, masks_ref[...], preferred_element_type=jnp.float32)    # (bm, C)
    o_ref[...] = (x_ref[...] * mixed).astype(o_ref.dtype)


def _round_up(n, m):
    return ((n + m - 1) // m) * m


def _choose_bm(B, C, T):
    """Largest batch tile that keeps the double-buffered working set comfortably
    inside the scoped-VMEM default on every TPU generation, while leaving >= 2
    grid steps (v7x megacore) whenever the batch is big enough to split."""
    row_bytes = 4 * (2 * C + T)                            # x row + out row + c row, f32
    vmem_rows = ((16 << 20) // (2 * row_bytes)) // 8 * 8   # <= 16 MiB double-buffered
    bm = min(_round_up(B, 8), 1024, max(8, vmem_rows))
    if _round_up(B, 8) >= 16:                              # batch can span >= 2 tiles of 8
        bm = min(bm, max(8, _round_up((B + 1) // 2, 8)))
    return bm


def csa_net(x, c, w_cls, b_cls, masks, *, bm=None):
    """x: (B, img_channel), c: (B, text_channel),
       w_cls: (K, text_channel)  (PyTorch Linear layout), b_cls: (K,),
       masks: (K, img_channel)."""
    B, C = x.shape
    _, T = c.shape
    K = masks.shape[0]

    wc = w_cls.T.astype(jnp.float32)                  # (T, K)  so the kernel does c @ wc
    bc = b_cls.reshape(1, K).astype(jnp.float32)      # keep 2D for TPU
    masks_scaled = masks.astype(jnp.float32) / K      # fold the mean's 1/K into this tiny constant

    if bm is None:
        bm = _choose_bm(B, C, T)

    # Ragged batch: partial tail block (OOB reads are per-row garbage that only lands
    # in dropped OOB stores) — avoids a whole extra HBM pass for jnp.pad.
    grid = (pl.cdiv(B, bm),)

    out = pl.pallas_call(
        csa_kernel,
        out_shape=jax.ShapeDtypeStruct((B, C), jnp.float32),
        grid_spec=pltpu.PrefetchScalarGridSpec(
            num_scalar_prefetch=0,
            grid=grid,
            in_specs=[
                pl.BlockSpec((bm, C), lambda i: (i, 0)),   # x   tile over batch
                pl.BlockSpec((bm, T), lambda i: (i, 0)),   # c   tile over batch
                pl.BlockSpec((T, K), lambda i: (0, 0)),    # classifier weight (resident)
                pl.BlockSpec((1, K), lambda i: (0, 0)),    # classifier bias   (resident)
                pl.BlockSpec((K, C), lambda i: (0, 0)),    # condition masks/K (resident)
            ],
            out_specs=pl.BlockSpec((bm, C), lambda i: (i, 0)),
        ),
        compiler_params=pltpu.CompilerParams(
            dimension_semantics=("parallel",)),
    )(x, c, wc, bc, masks_scaled)

    return out


def _reference(x, c, w_cls, b_cls, masks):
    B, C = x.shape
    K = masks.shape[0]
    weight = jax.nn.softmax(c @ w_cls.T + b_cls, axis=-1)              # (B, K)
    xr = jnp.broadcast_to(x[:, None, :], (B, K, C))
    xr = xr * masks[None, :, :]
    xr = xr * weight[:, :, None]
    return xr.mean(axis=1)                                             # (B, C)


if __name__ == "__main__":
    # Model hyperparameters (n_conditions must be 5: forward hard-codes expand(-1, 5, -1))
    n_conditions = 5
    text_channel = 32
    img_channel = 128

    key = jax.random.PRNGKey(0)
    kx, kc, kw, kb, km = jax.random.split(key, 5)

    # Deterministic synthetic parameters (shapes per nn.Linear / nn.Embedding in __init__)
    w_cls = jax.random.normal(kw, (n_conditions, text_channel), dtype=jnp.float32) * 0.1
    b_cls = jax.random.normal(kb, (n_conditions,), dtype=jnp.float32) * 0.1
    masks = jax.random.normal(km, (n_conditions, img_channel), dtype=jnp.float32)

    ok = True
    # Test an even batch, an uneven one (ragged tail tile), and a tiny sub-tile batch.
    for B in (16, 13, 4):
        kxb, kcb = jax.random.split(jax.random.fold_in(key, B), 2)
        x = jax.random.normal(kxb, (B, img_channel), dtype=jnp.float32)
        c = jax.random.normal(kcb, (B, text_channel), dtype=jnp.float32)

        out = csa_net(x, c, w_cls, b_cls, masks)
        out = jax.block_until_ready(out)

        ref = _reference(x, c, w_cls, b_cls, masks)
        assert out.shape == (B, img_channel)
        assert jnp.allclose(out, ref, atol=1e-5, rtol=1e-5), (
            f"B={B}: max abs err {jnp.max(jnp.abs(out - ref))}")
        ok = ok and True

    if ok:
        print("KERNEL_OK")
</pallas_src>

<mosaic_0001>
module attributes {stable_mosaic.version = 11 : i64} {
  func.func @csa_kernel(%arg0: i32, %arg1: memref<8x128xf32, #tpu.memory_space<vmem>>, %arg2: memref<8x32xf32, #tpu.memory_space<vmem>>, %arg3: memref<32x5xf32, #tpu.memory_space<vmem>>, %arg4: memref<1x5xf32, #tpu.memory_space<vmem>>, %arg5: memref<5x128xf32, #tpu.memory_space<vmem>>, %arg6: memref<8x128xf32, #tpu.memory_space<vmem>>) attributes {dimension_semantics = [#tpu.dimension_semantics<parallel>], iteration_bounds = array<i64: 2>, scalar_prefetch = 0 : i64, scratch_operands = 0 : i64, tpu.core_type = #tpu.core_type<tc>, window_params = [{transform_indices = @transform_0, window_bounds = array<i64: 8, 128>}, {transform_indices = @transform_1, window_bounds = array<i64: 8, 32>}, {pipeline_mode = #tpu.pipeline_mode<synchronous>, transform_indices = @transform_2, window_bounds = array<i64: 32, 5>}, {pipeline_mode = #tpu.pipeline_mode<synchronous>, transform_indices = @transform_3, window_bounds = array<i64: 1, 5>}, {pipeline_mode = #tpu.pipeline_mode<synchronous>, transform_indices = @transform_4, window_bounds = array<i64: 5, 128>}, {transform_indices = @transform_5, window_bounds = array<i64: 8, 128>}]} {
    %c0 = arith.constant 0 : index
    %c0_0 = arith.constant 0 : index
    %0 = vector.load %arg2[%c0, %c0_0] : memref<8x32xf32, #tpu.memory_space<vmem>>, vector<8x32xf32>
    %c0_1 = arith.constant 0 : index
    %c0_2 = arith.constant 0 : index
    %1 = vector.load %arg3[%c0_1, %c0_2] : memref<32x5xf32, #tpu.memory_space<vmem>>, vector<32x5xf32>
    %cst = arith.constant dense<0.000000e+00> : vector<8x5xf32>
    %2 = tpu.matmul %0, %1, %cst {dimension_numbers = #tpu.dot_dimension_numbers<[1], [0], [0], [1], [0, 0, 1, 1], [], []>} : vector<8x32xf32>, vector<32x5xf32>, vector<8x5xf32> -> vector<8x5xf32>
    %c0_3 = arith.constant 0 : index
    %c0_4 = arith.constant 0 : index
    %3 = vector.load %arg4[%c0_3, %c0_4] : memref<1x5xf32, #tpu.memory_space<vmem>>, vector<1x5xf32>
    %4 = vector.broadcast %3 : vector<1x5xf32> to vector<8x5xf32>
    %5 = arith.addf %2, %4 : vector<8x5xf32>
    %cst_5 = arith.constant dense<0xFF800000> : vector<8xf32>
    %6 = vector.multi_reduction <maximumf>, %5, %cst_5 [1] : vector<8x5xf32> to vector<8xf32>
    %7 = vector.shape_cast %6 : vector<8xf32> to vector<8x1xf32>
    %8 = vector.broadcast %7 : vector<8x1xf32> to vector<8x5xf32>
    %9 = arith.subf %5, %8 : vector<8x5xf32>
    %10 = math.exp %9 : vector<8x5xf32>
    %cst_6 = arith.constant dense<0.000000e+00> : vector<8xf32>
    %11 = vector.multi_reduction <add>, %10, %cst_6 [1] : vector<8x5xf32> to vector<8xf32>
    %12 = vector.shape_cast %11 : vector<8xf32> to vector<8x1xf32>
    %13 = tpu.reciprocal %12 : vector<8x1xf32> -> vector<8x1xf32>
    %14 = vector.broadcast %13 : vector<8x1xf32> to vector<8x5xf32>
    %15 = arith.mulf %10, %14 : vector<8x5xf32>
    %c0_7 = arith.constant 0 : index
    %c0_8 = arith.constant 0 : index
    %16 = vector.load %arg5[%c0_7, %c0_8] : memref<5x128xf32, #tpu.memory_space<vmem>>, vector<5x128xf32>
    %cst_9 = arith.constant dense<0.000000e+00> : vector<8x128xf32>
    %17 = tpu.matmul %15, %16, %cst_9 {dimension_numbers = #tpu.dot_dimension_numbers<[1], [0], [0], [1], [0, 0, 1, 1], [], []>} : vector<8x5xf32>, vector<5x128xf32>, vector<8x128xf32> -> vector<8x128xf32>
    %c0_10 = arith.constant 0 : index
    %c0_11 = arith.constant 0 : index
    %18 = vector.load %arg1[%c0_10, %c0_11] : memref<8x128xf32, #tpu.memory_space<vmem>>, vector<8x128xf32>
    %19 = arith.mulf %18, %17 : vector<8x128xf32>
    %c0_12 = arith.constant 0 : index
    %c0_13 = arith.constant 0 : index
    %20 = vector.load %arg6[%c0_12, %c0_13] : memref<8x128xf32, #tpu.memory_space<vmem>>, vector<8x128xf32>
    tpu.vector_store %arg6[%c0_12, %c0_13], %19 {strides = array<i32>} : memref<8x128xf32, #tpu.memory_space<vmem>>, vector<8x128xf32>,
    return
  }
  func.func @transform_0(%arg0: i32) -> (i32, i32) {
    %c0_i32 = arith.constant 0 : i32
    %c0_i32_0 = arith.constant 0 : i32
    return %arg0, %c0_i32 : i32, i32
  }
  func.func @transform_1(%arg0: i32) -> (i32, i32) {
    %c0_i32 = arith.constant 0 : i32
    %c0_i32_0 = arith.constant 0 : i32
    return %arg0, %c0_i32 : i32, i32
  }
  func.func @transform_2(%arg0: i32) -> (i32, i32) {
    %c0_i32 = arith.constant 0 : i32
    %c0_i32_0 = arith.constant 0 : i32
    %c0_i32_1 = arith.constant 0 : i32
    return %c0_i32, %c0_i32_0 : i32, i32
  }
  func.func @transform_3(%arg0: i32) -> (i32, i32) {
    %c0_i32 = arith.constant 0 : i32
    %c0_i32_0 = arith.constant 0 : i32
    %c0_i32_1 = arith.constant 0 : i32
    return %c0_i32, %c0_i32_0 : i32, i32
  }
  func.func @transform_4(%arg0: i32) -> (i32, i32) {
    %c0_i32 = arith.constant 0 : i32
    %c0_i32_0 = arith.constant 0 : i32
    %c0_i32_1 = arith.constant 0 : i32
    return %c0_i32, %c0_i32_0 : i32, i32
  }
  func.func @transform_5(%arg0: i32) -> (i32, i32) {
    %c0_i32 = arith.constant 0 : i32
    %c0_i32_0 = arith.constant 0 : i32
    return %arg0, %c0_i32 : i32, i32
  }
}

</mosaic_0001>

<bundles_post_ra>
// kernel: tpu_custom_call.1
= control target key start
LH: loop header
LB: loop body
LE: loop exit
PB: predicated region body
PF: predicated region fallthrough
CT: control target
= control target key end

     0   :  { %10 = vsyncpa [#allocation3], 0  ;;  %s820_s0 = inlined_call_operand.vmem [shape: f32[16,128], index: 0, kind: input, shape index: {}]   ;;  %s821_s1 = inlined_call_operand.vmem [shape: f32[16,32], index: 1, kind: input, shape index: {}]   ;;  %s822_s2 = inlined_call_operand.vmem [shape: f32[32,5], index: 2, kind: input, shape index: {}]   ;;  %s823_s3 = inlined_call_operand.vmem [shape: f32[1,5], index: 3, kind: input, shape index: {}]   ;;  %s824_s4 = inlined_call_operand.vmem [shape: f32[5,128], index: 4, kind: input, shape index: {}]   ;;  %s825_s5 = inlined_call_operand.hbm [shape: f32[16,128], index: 5, kind: output, shape index: {}]  }
   0x1   :  { %12 = vsyncpa [#allocation3 + $0x1], 0  ;;  %s689_s18 = smov 0   ;;  %s691_s19 = smov 0  }
   0x2   :  { %s693_s20 = smov 0   ;;  %s695_s21 = smov 0  }
   0x3 LB: > { %s710_s22 = sadd.s32 4294967295, %s653_s21   ;;  %s501_s23 = sadd.s32 4294967294, %s653_s21   ;;  %s653_s21 = sphi %s695_s21, %s831_s21   ;;  %s649_s20 = sphi %s693_s20, %s830_s20   ;;  %s645_s19 = sphi %s691_s19, %s829_s19   ;;  %s641_s18 = sphi %s689_s18, %s828_s18  }
   0x4   : > { %s714_s24 = sadd.s32 1, %s653_s21   ;;  %s140_s25 = sadd.s32 1, %s649_s20 }
   0x5   : > { %s137_s26 = ssub.s32 %s653_s21, %s714_s24  ;;  %p150_p0 = scmp.ne.s32.totalorder %s649_s20, %s645_s19 }
   0x6   : > { %p138_p1 = scmp.eq.s32.totalorder %s137_s26, 0  ;;  %p151_p2 = scmp.eq.s32.totalorder %s710_s22, 1 }
   0x7   : > { %p156_p3 = scmp.ne.s32.totalorder %s645_s19, %s641_s18  ;;  %p157_p4 = scmp.eq.s32.totalorder %s501_s23, 1 }
   0x8   : > { %s725_s27 = scalar_select %p138_p1, %s649_s20, %s140_s25  }
   0x9   : > { %p727_p5 = por %p151_p2, %p150_p0  ;;  %p731_p6 = por %p157_p4, %p156_p3 }
   0xa   : > { %p504_p7 = scmp.ge.s32.totalorder %s653_s21, 1  ;;  %p198_p8 = scmp.lt.s32.totalorder %s653_s21, 3 }
   0xc   : > { %p199_p9 = pnand %p504_p7, %p198_p8 }
   0xd   : > { %v238_v0 = vld [vmem:[%s822_s2] sm:$0xff] (!%p199_p9)  ;;  %v239_v1 = vld [vmem:[%s822_s2 + $0x8] sm:$0xff] (!%p199_p9)  ;;  %v240_v2 = vld [vmem:[%s822_s2 + $0x10] sm:$0xff] (!%p199_p9)  ;;  %v655_v3 = vmov (!%p199_p9), 0.0|0.0   ;;  %vm656_vm0 = vmmov (!%p199_p9), 0   ;;  %v657_v6 = vmov (!%p199_p9), 0.0  }
   0xe   : > { %202 = sbr.rel (%p199_p9) target bundleno = 782 (0x30e), region = 40  ;;  %539 = vmatprep.subr.bf16.mxu0 (!%p199_p9), %v655_v3  ;;  %v540_v4 = vpack.c.bf16 (!%p199_p9), %v239_v1, %v238_v0  ;;  %v241_v5 = vld [vmem:[%s822_s2 + $0x18] sm:$0xff] (!%p199_p9)  ;;  %531 = vmatprep.mubr.msk.f32.mxu0 (!%p199_p9), %vm656_vm0, %v657_v6  ;;  %p229_p10 = scmp.lt.s32.totalorder (!%p199_p9), %s710_s22, 1  ;;  %vm249_vm1 = vcmask (!%p199_p9), 261120   ;;  %v508_v9 = vld [vmem:[%s823_s3] ss:$0 sm:$0xff] (!%p199_p9) }
   0xf   : > { %534 = vmatprep.subr.mxu1 (!%p199_p9), %v657_v6  ;;  %536 = vmatprep.mubr.msk.f32.mxu1 (!%p199_p9), %vm656_vm0, %v657_v6  ;;  %v543_v7 = vpack.c.bf16 (!%p199_p9), %v241_v5, %v240_v2  ;;  %vm323_vm2 = vcmask (!%p199_p9), 39936   ;;  %v335_v19 = vld [vmem:[%s824_s4] sm:$0x1f] (!%p199_p9)  ;;  %vm339_vm3 = vcmask (!%p199_p9), 1044480   ;;  %s226_s6 = sand.u32 (!%p199_p9), 1, %s645_s19   ;;  %s513_s11 = sshll.u32 (!%p199_p9), %s710_s22, 7 }
  0x10   : > { %541 = vmatpush3.bf16.msra.mxu0 (!%p199_p9), %v540_v4  ;;  %535 = vmatpush3.msk.msra.mxu1 (!%p199_p9), %vm339_vm3, %v335_v19  ;;  %s505_s7 = sshll.u32 (!%p199_p9), %s226_s6, 3  ;;  %s778_s23 = scalar_lea.hbm (!%p199_p9), %s825_s5, %s513_s11 }
  0x11   : > { %542 = vmatprep.subr.bf16.mxu0 (!%p199_p9), %v655_v3  ;;  %s228_s12 = scalar_lea.vmem (!%p199_p9), [#allocation2], %s505_s7 }
  0x12   : > { %s430_s15 = sshll.u32 (!%p199_p9), %s228_s12, 4  ;;  %s780_s15 = int_to_ptr.vmem [resolvable:$true] %s430_s15 }
  0x14   : > { %544 = vmatpush3.bf16.msra.mxu0 (!%p199_p9), %v543_v7 }
  0x15   : > { %s751_s13 = scalar_select %p229_p10, %s710_s22, 1 }
  0x16   : > { %s658_s22 = smov [#allocation2]  }
  0x17   : > { %s506_s14 = sshll.u32 %s751_s13, 3  ;;  %s417_s13 = scalar_lea.sflag [#allocation3], %s226_s6 }
  0x18   : > { %s236_s17 = scalar_lea.vmem %s821_s1, %s506_s14  ;;  %s232_s10 = scalar_lea.vmem %s820_s0, %s506_s14 }
  0x19   : > { %v237_v8 = vld [vmem:[%s236_s17] sm:$0xff]  ;;  %s591_s14 = scalar_lea.vmem %s780_s15, 128  ;;  %s595_s25 = sshll.u32 %s658_s22, 4  ;;  %s596_s25 = int_to_ptr.vmem [resolvable:$false] %s595_s25 }
  0x1a   : > { %532 = vmatmul.mubr.msk.f32.vlgmr.msra.gmra.mrb[0].mxu0 %vm249_vm1, %v237_v8  ;;  %v413_v23 = vld [vmem:[%s232_s10] sm:$0xff]  ;;  %p592_p11 = scmp.ne.s32.totalorder %s780_s15, %s591_s14  ;;  %s597_s26 = scalar_lea.vmem %s596_s25, 256 }
  0x1b   : > { %p598_p0 = scmp.lt.s32.totalorder %s780_s15, %s596_s25  ;;  %p599_p1 = scmp.lt.s32.totalorder %s597_s26, %s591_s14 }
  0x1c   : > { %p593_p12 = pnand %p592_p11, %p727_p5 }
  0x1d   : > { %p600_p2 = por %p599_p1, %p598_p0 }
  0x1e   : > { %p594_p13 = pneg %p593_p12 }
  0x20   : > { %p601_p3 = pnand %p600_p2, %p594_p13 }
  0xed   : > { %v319_v10 = vpop.f32.mrb[0].mxu0 }
  0xee   : > { %v320_v11 = vadd.f32 %v508_v9, %v319_v10  ;;  %v533_v12 = vpop.f32.mrb[1].mxu0 }
  0xf0   : > { %v324_v13 = vsel %vm323_vm2, %v320_v11, -inf }
  0xf1   : > { %325 = vmax.xlane.f32.xlu0 %v324_v13 }
 0x17e   : > { %v326_v14 = vpop.xlane.xlu0 %325 }
 0x17f   : > { %v327_v15 = vsub.f32 %v320_v11, %v326_v14 }
 0x181   : > { %v328_v16 = vmul.f32 1.442695, %v327_v15 }
 0x183   : > { %587 = vpow2.f32 %v328_v16 }
 0x18d   : > { %v588_v17 = vpop.eup %587 }
 0x18e   : > { %v330_v18 = vsel %vm323_vm2, %v588_v17, 0.0 }
 0x18f   : > { %331 = vadd.xlane.f32.xlu0 %v330_v18 }
 0x21c   : > { %v332_v20 = vpop.xlane.xlu0 %331 }
 0x21d   : > { %589 = vrcp.f32 %v332_v20 }
 0x227   : > { %v590_v21 = vpop.eup %589 }
 0x228   : > { %v334_v22 = vmul.f32 %v590_v21, %v588_v17 }
 0x22a   : > { %537 = vmatmul.mubr.msk.f32.vlgmr.msra.gmra.mrb[0].mxu1 %vm323_vm2, %v334_v22 }
 0x2fd   : > { %v409_v24 = vpop.f32.mrb[0].mxu1 }
 0x2fe   : > { %v414_v25 = vmul.f32 %v413_v23, %v409_v24  ;;  %v538_v26 = vpop.f32.mrb[1].mxu1 }
 0x300   : > { %415 = vst [vmem:[%s228_s12] sm:$0xff] %v414_v25 }
 0x301   : > { %604 = shalt.err (!%p601_p3)
}
 0x302   : > { %s605_s30 = scalar_lea.hbm %s778_s23, 128  ;;  %s609_s8 = scalar_lea.hbm %s825_s5, 256 }
 0x303   : > { %p606_p4 = scmp.ne.s32.totalorder %s778_s23, %s605_s30  ;;  %p610_p9 = scmp.lt.u32.totalorder %s778_s23, %s825_s5 }
 0x304   : > { %p611_p10 = scmp.lt.u32.totalorder %s609_s8, %s605_s30  ;;  %p613_p12 = scmp.lt.u32.totalorder %s605_s30, %s778_s23 }
 0x305   : > { %p607_p7 = pnand %p606_p4, %p727_p5 }
 0x306   : > { %p612_p11 = por %p611_p10, %p610_p9 }
 0x307   : > { %p608_p8 = pneg %p607_p7 }
 0x308   : > { %p614_p13 = por %p613_p12, %p612_p11 }
 0x30a   : > { %p615_p0 = pnand %p614_p13, %p608_p8 }
 0x30c   : > { %618 = shalt.err (!%p615_p0)
}
 0x30d   : > { %545 = dma.vmem_to_hbm [thread:$0]  (%p727_p5), %s780_s15, 128, %s778_s23, %s417_s13  }
 0x30e PF: > { %p551_p1 = scmp.ge.s32.totalorder %s653_s21, 2  ;;  %s442_s11 = sand.u32 1, %s641_s18  }
 0x30f   : > { %s443_s12 = scalar_lea.sflag [#allocation3], %s442_s11 }
 0x310   : > { %p548_p2 = pnand %p551_p1, %p731_p6 }
 0x312   : > { %636 = dma.done.wait (!%p548_p2), %s443_s12, 128  }
 0x313   : > { %638 = vsyncadd (!%p548_p2), %s443_s12, 4294967168  ;;  %p15_p3 = scmp.ge.s32.totalorder %s714_s24, 4   ;;  %s828_s18 = smov %s645_s19 }
 0x314   : > { %s829_s19 = smov %s649_s20  ;;  %s830_s20 = smov %s725_s27 }
 0x315   : > { %s831_s21 = smov %s714_s24  ;;  %17 = sbr.rel (!%p15_p3) target bundleno = 3 (0x3), region = 78 }
 0x31c   :  { %448 = vsyncpa [#allocation3], 1 }
 0x31d   :  { %450 = vsyncpa [#allocation3 + $0x1], 1 }

</bundles_post_ra>
